<compile_context>
chip_gen: v6e
topology: v6e:2x2x1
jax: 0.10.0
libtpu: 0.0.40
codegen_flags: <defaults>
</compile_context>

<pallas_src>
import functools
import math

import jax
import jax.numpy as jnp
from jax import lax
from jax.experimental import pallas as pl
from jax.experimental.pallas import tpu as pltpu


def _layernorm(x, gamma, beta, eps):
    mean = jnp.mean(x, axis=-1, keepdims=True)
    xc = x - mean
    var = jnp.mean(xc * xc, axis=-1, keepdims=True)
    return gamma * (xc * lax.rsqrt(var + eps)) + beta


def _encoder_block_kernel(x_ref, wqkv_ref, bqkv_ref, wo_ref, bo_ref,
                          g1_ref, be1_ref, w1_ref, bf1_ref, w2_ref, bf2_ref,
                          g2_ref, be2_ref, o_ref, ctx_ref,
                          *, num_heads, head_dim, seq_len, batch_tile, eps,
                          mxu_dtype):
    E = num_heads * head_dim
    R = batch_tile * seq_len
    cd = lambda a: a.astype(mxu_dtype)   # activation-side MXU cast (no-op for f32)

    x = x_ref[...].astype(jnp.float32)                        # (R, E)

    # Fused QKV projection: one (R, E) @ (E, 3E) matmul.  Weights are
    # pre-transposed / pre-stacked on the host; 1/sqrt(head_dim) is folded
    # into the Q columns, so no in-kernel transposes or scaling.
    qkv = jnp.dot(cd(x), wqkv_ref[...],
                  preferred_element_type=jnp.float32) + bqkv_ref[...]
    q = qkv[:, :E].reshape(batch_tile, seq_len, E)
    k = qkv[:, E:2 * E].reshape(batch_tile, seq_len, E)
    v = qkv[:, 2 * E:].reshape(batch_tile, seq_len, E)

    # Per-head attention, batched over the batch rows with a single
    # dot_general per step (no Python batch loop, no head concatenation).
    # Each head's (R, head_dim) context lands in its column slice of the
    # (R, E) VMEM scratch so the output projection below is ONE full-K matmul.
    # TODO(synk): switch to lax.fori_loop(..., unroll=True) if num_heads grows.
    for h in range(num_heads):
        c0, c1 = h * head_dim, (h + 1) * head_dim
        qh, kh, vh = q[:, :, c0:c1], k[:, :, c0:c1], v[:, :, c0:c1]
        # scores = q @ k^T, batched over batch rows (contraction on features).
        s = lax.dot_general(cd(qh), cd(kh), (((2,), (2,)), ((0,), (0,))),
                            preferred_element_type=jnp.float32)   # (bt, S, S)
        s = s - jnp.max(s, axis=-1, keepdims=True)
        e = jnp.exp(s)
        den = jnp.sum(e, axis=-1, keepdims=True)
        inv = pl.reciprocal(den, approx=True)
        inv = inv * (2.0 - den * inv)          # one Newton step -> full f32
        p = e * inv
        ctx = lax.dot_general(cd(p), cd(vh), (((2,), (1,)), ((0,), (0,))),
                              preferred_element_type=jnp.float32)  # (bt, S, Dh)
        ctx_ref[:, c0:c1] = ctx.reshape(R, head_dim)

    # Single fused output projection over all heads: (R, E) @ (E, E).
    attn = jnp.dot(cd(ctx_ref[...]), wo_ref[...],
                   preferred_element_type=jnp.float32) + bo_ref[...]

    # TODO(synk): nn.Dropout is identity here (eval mode / p=0.0); train-mode
    # random masking is not implemented.
    y1 = _layernorm(attn + x, g1_ref[...], be1_ref[...], eps)

    # FeedForward: (R, E) @ (E, F) -> ReLU -> (R, F) @ (F, E).
    hid = jnp.dot(cd(y1), w1_ref[...], preferred_element_type=jnp.float32)
    hid = jnp.maximum(hid + bf1_ref[...], 0.0)
    out3 = jnp.dot(cd(hid), w2_ref[...],
                   preferred_element_type=jnp.float32) + bf2_ref[...]
    y2 = _layernorm(out3 + y1, g2_ref[...], be2_ref[...], eps)

    o_ref[...] = y2.astype(o_ref.dtype)


def encoder_block_forward(x2d, packed, *, num_heads, seq_len, batch_tile,
                          eps=1e-10, mxu_dtype=jnp.float32,
                          vmem_limit_bytes=None):
    BS, E = x2d.shape
    B = BS // seq_len
    assert BS == B * seq_len and B % batch_tile == 0
    head_dim = E // num_heads
    F = packed["w1"].shape[1]
    R = batch_tile * seq_len

    kernel = functools.partial(
        _encoder_block_kernel, num_heads=num_heads, head_dim=head_dim,
        seq_len=seq_len, batch_tile=batch_tile, eps=eps, mxu_dtype=mxu_dtype)

    # Weight/bias blocks: full arrays with a constant index_map -> the pipeline
    # revisits the same block every grid step (no repeated HBM fetch).
    const = lambda shape: pl.BlockSpec(shape, lambda i: (0,) * len(shape))
    row_spec = pl.BlockSpec((R, E), lambda i: (i, 0))

    return pl.pallas_call(
        kernel,
        out_shape=jax.ShapeDtypeStruct((BS, E), jnp.float32),
        grid_spec=pltpu.PrefetchScalarGridSpec(
            num_scalar_prefetch=0,
            grid=(B // batch_tile,),
            in_specs=[
                row_spec,
                const((E, 3 * E)), const((1, 3 * E)),
                const((E, E)), const((1, E)),
                const((1, E)), const((1, E)),
                const((E, F)), const((1, F)),
                const((F, E)), const((1, E)),
                const((1, E)), const((1, E)),
            ],
            out_specs=pl.BlockSpec((R, E), lambda i: (i, 0)),
            scratch_shapes=[pltpu.VMEM((R, E), jnp.float32)],
        ),
        compiler_params=pltpu.CompilerParams(
            dimension_semantics=("parallel",),
            vmem_limit_bytes=vmem_limit_bytes),
    )(x2d, packed["wqkv"], packed["bqkv"], packed["wo_t"], packed["bo"],
      packed["gamma1"], packed["beta1"], packed["w1"], packed["bf1"],
      packed["w2"], packed["bf2"], packed["gamma2"], packed["beta2"])


def encoder_forward(src_seq, packed_layers, *, num_heads, batch_tile=None,
                    mxu_dtype=jnp.float32, vmem_limit_bytes=None):
    B, S, E = src_seq.shape
    if batch_tile is None:
        # grid extent 1: best for single-TensorCore v5e/v6e (no per-step
        # overhead) and maximal MXU row fill (R = B*S rows per matmul).
        batch_tile = B
    x2d = src_seq.reshape(B * S, E)          # wrapper-side flatten (free)
    for packed in packed_layers:
        x2d = encoder_block_forward(
            x2d, packed, num_heads=num_heads, seq_len=S,
            batch_tile=batch_tile, mxu_dtype=mxu_dtype,
            vmem_limit_bytes=vmem_limit_bytes)
    return x2d.reshape(B, S, E)


# ---------------------------------------------------------------------------
# Parameter init (mirrors the PyTorch module's __init__ ranges) + host-side
# packing (fuse / pre-transpose / fold the attention scale / optional bf16).
# ---------------------------------------------------------------------------
def init_encoder_params(key, num_layers, num_heads, emb_dim, ffn_dim):
    head_dim = emb_dim // num_heads
    c_qv = math.sqrt(6.0 / (emb_dim + head_dim))
    c_o = math.sqrt(6.0 / (num_heads * head_dim + emb_dim))
    c1 = math.sqrt(6.0 / (emb_dim + ffn_dim))
    c2 = math.sqrt(6.0 / (ffn_dim + emb_dim))
    b_in = 1.0 / math.sqrt(emb_dim)
    b_cat = 1.0 / math.sqrt(num_heads * head_dim)
    b_ffn = 1.0 / math.sqrt(ffn_dim)

    def u(k, shape, c):
        return jax.random.uniform(k, shape, jnp.float32, -c, c)

    layers = []
    for _ in range(num_layers):
        key, *ks = jax.random.split(key, 13)
        layers.append({
            "wq": u(ks[0], (num_heads, head_dim, emb_dim), c_qv),
            "bq": u(ks[1], (num_heads, head_dim), b_in),
            "wk": u(ks[2], (num_heads, head_dim, emb_dim), c_qv),
            "bk": u(ks[3], (num_heads, head_dim), b_in),
            "wv": u(ks[4], (num_heads, head_dim, emb_dim), c_qv),
            "bv": u(ks[5], (num_heads, head_dim), b_in),
            "wo": u(ks[6], (emb_dim, num_heads * head_dim), c_o),
            "bo": u(ks[7], (emb_dim,), b_cat),
            "w1": u(ks[8], (ffn_dim, emb_dim), c1),
            "bf1": u(ks[9], (ffn_dim,), b_in),
            "w2": u(ks[10], (emb_dim, ffn_dim), c2),
            "bf2": u(ks[11], (emb_dim,), b_ffn),
            "gamma1": jnp.ones((emb_dim,), jnp.float32),
            "beta1": jnp.zeros((emb_dim,), jnp.float32),
            "gamma2": jnp.ones((emb_dim,), jnp.float32),
            "beta2": jnp.zeros((emb_dim,), jnp.float32),
        })
    return layers


def pack_block_params(raw, mxu_dtype=jnp.float32):
    """Fuse QKV, pre-transpose all weight matrices, fold the 1/sqrt(d) scale
    into Q, and (optionally) store weight matrices in bf16 host-side.  Biases
    and LayerNorm params always stay f32 (added after f32 accumulation)."""
    H, Dh, E = raw["wq"].shape
    scale = 1.0 / math.sqrt(Dh)

    def stack_heads(w):            # (H, Dh, E) -> (E, H*Dh) == concat_h w[h].T
        return jnp.transpose(w, (2, 0, 1)).reshape(E, H * Dh)

    wqkv = jnp.concatenate(
        [stack_heads(raw["wq"]) * scale,          # scale folded into Q
         stack_heads(raw["wk"]),
         stack_heads(raw["wv"])], axis=1)                       # (E, 3E)
    bqkv = jnp.concatenate(
        [raw["bq"].reshape(-1) * scale,
         raw["bk"].reshape(-1),
         raw["bv"].reshape(-1)]).reshape(1, 3 * H * Dh)

    wcast = lambda w: w.astype(mxu_dtype)
    return {
        "wqkv": wcast(wqkv), "bqkv": bqkv,
        "wo_t": wcast(raw["wo"].T),               # (H*Dh, E) pre-transposed
        "bo": raw["bo"].reshape(1, E),
        "w1": wcast(raw["w1"].T),                 # (E, F)  pre-transposed
        "bf1": raw["bf1"].reshape(1, -1),
        "w2": wcast(raw["w2"].T),                 # (F, E)  pre-transposed
        "bf2": raw["bf2"].reshape(1, E),
        "gamma1": raw["gamma1"].reshape(1, E), "beta1": raw["beta1"].reshape(1, E),
        "gamma2": raw["gamma2"].reshape(1, E), "beta2": raw["beta2"].reshape(1, E),
    }


# ---------------------------------------------------------------------------
# Plain-JAX reference mirroring the PyTorch Encoder forward (dropout = eval).
# ---------------------------------------------------------------------------
def _reference_encoder(x, raw_layers, eps=1e-10):
    def ln(z, g, b):
        m = z.mean(-1, keepdims=True)
        var = ((z - m) ** 2).mean(-1, keepdims=True)
        return g * (z - m) / jnp.sqrt(var + eps) + b

    def layer(x, p):
        H, Dh, _ = p["wq"].shape
        outs = []
        for h in range(H):
            q = x @ p["wq"][h].T + p["bq"][h]
            k = x @ p["wk"][h].T + p["bk"][h]
            v = x @ p["wv"][h].T + p["bv"][h]
            s = jnp.einsum("bqd,bkd->bqk", q, k) / math.sqrt(Dh)
            w = jax.nn.softmax(s, axis=2)
            outs.append(jnp.einsum("bqk,bkd->bqd", w, v))
        out1 = jnp.concatenate(outs, axis=-1) @ p["wo"].T + p["bo"]
        out2 = ln(out1 + x, p["gamma1"], p["beta1"])
        hid = jax.nn.relu(out2 @ p["w1"].T + p["bf1"])
        out3 = hid @ p["w2"].T + p["bf2"]
        return ln(out3 + out2, p["gamma2"], p["beta2"])

    for p in raw_layers:
        x = layer(x, p)
    return x


if __name__ == "__main__":
    NUM_HEADS, EMB_DIM, FFN_DIM, NUM_LAYERS = 4, 32, 64, 2
    B, S = 2, 8

    root = jax.random.PRNGKey(0)
    k_x, k_p = jax.random.split(root)
    src_seq = jax.random.normal(k_x, (B, S, EMB_DIM), jnp.float32)

    raw_layers = init_encoder_params(k_p, NUM_LAYERS, NUM_HEADS, EMB_DIM, FFN_DIM)
    # f32 weights for the exact reference check; pass mxu_dtype=jnp.bfloat16
    # here for halved weight DMA / ~2x MXU rate on all TPU generations.
    packed_layers = [pack_block_params(p, mxu_dtype=jnp.float32)
                     for p in raw_layers]

    out = encoder_forward(src_seq, packed_layers, num_heads=NUM_HEADS,
                          batch_tile=None,        # -> batch_tile = B, grid = 1
                          mxu_dtype=jnp.float32)
    out = jax.block_until_ready(out)

    ref = _reference_encoder(src_seq, raw_layers)
    assert out.shape == (B, S, EMB_DIM)
    assert jnp.allclose(out, ref, atol=1e-3, rtol=1e-3), \
        float(jnp.max(jnp.abs(out - ref)))

    print("KERNEL_OK")
</pallas_src>

<mosaic_0001>
module attributes {stable_mosaic.version = 11 : i64} {
  func.func @_encoder_block_kernel(%arg0: i32, %arg1: memref<16x32xf32, #tpu.memory_space<vmem>>, %arg2: memref<32x96xf32, #tpu.memory_space<vmem>>, %arg3: memref<1x96xf32, #tpu.memory_space<vmem>>, %arg4: memref<32x32xf32, #tpu.memory_space<vmem>>, %arg5: memref<1x32xf32, #tpu.memory_space<vmem>>, %arg6: memref<1x32xf32, #tpu.memory_space<vmem>>, %arg7: memref<1x32xf32, #tpu.memory_space<vmem>>, %arg8: memref<32x64xf32, #tpu.memory_space<vmem>>, %arg9: memref<1x64xf32, #tpu.memory_space<vmem>>, %arg10: memref<64x32xf32, #tpu.memory_space<vmem>>, %arg11: memref<1x32xf32, #tpu.memory_space<vmem>>, %arg12: memref<1x32xf32, #tpu.memory_space<vmem>>, %arg13: memref<1x32xf32, #tpu.memory_space<vmem>>, %arg14: memref<16x32xf32, #tpu.memory_space<vmem>>, %arg15: memref<16x32xf32, #tpu.memory_space<vmem>>) attributes {dimension_semantics = [#tpu.dimension_semantics<parallel>], iteration_bounds = array<i64: 1>, scalar_prefetch = 0 : i64, scratch_operands = 1 : i64, tpu.core_type = #tpu.core_type<tc>, window_params = [{transform_indices = @transform_0, window_bounds = array<i64: 16, 32>}, {pipeline_mode = #tpu.pipeline_mode<synchronous>, transform_indices = @transform_1, window_bounds = array<i64: 32, 96>}, {pipeline_mode = #tpu.pipeline_mode<synchronous>, transform_indices = @transform_2, window_bounds = array<i64: 1, 96>}, {pipeline_mode = #tpu.pipeline_mode<synchronous>, transform_indices = @transform_3, window_bounds = array<i64: 32, 32>}, {pipeline_mode = #tpu.pipeline_mode<synchronous>, transform_indices = @transform_4, window_bounds = array<i64: 1, 32>}, {pipeline_mode = #tpu.pipeline_mode<synchronous>, transform_indices = @transform_5, window_bounds = array<i64: 1, 32>}, {pipeline_mode = #tpu.pipeline_mode<synchronous>, transform_indices = @transform_6, window_bounds = array<i64: 1, 32>}, {pipeline_mode = #tpu.pipeline_mode<synchronous>, transform_indices = @transform_7, window_bounds = array<i64: 32, 64>}, {pipeline_mode = #tpu.pipeline_mode<synchronous>, transform_indices = @transform_8, window_bounds = array<i64: 1, 64>}, {pipeline_mode = #tpu.pipeline_mode<synchronous>, transform_indices = @transform_9, window_bounds = array<i64: 64, 32>}, {pipeline_mode = #tpu.pipeline_mode<synchronous>, transform_indices = @transform_10, window_bounds = array<i64: 1, 32>}, {pipeline_mode = #tpu.pipeline_mode<synchronous>, transform_indices = @transform_11, window_bounds = array<i64: 1, 32>}, {pipeline_mode = #tpu.pipeline_mode<synchronous>, transform_indices = @transform_12, window_bounds = array<i64: 1, 32>}, {transform_indices = @transform_13, window_bounds = array<i64: 16, 32>}]} {
    %c0 = arith.constant 0 : index
    %c0_0 = arith.constant 0 : index
    %0 = vector.load %arg1[%c0, %c0_0] : memref<16x32xf32, #tpu.memory_space<vmem>>, vector<16x32xf32>
    %c0_1 = arith.constant 0 : index
    %c0_2 = arith.constant 0 : index
    %1 = vector.load %arg2[%c0_1, %c0_2] : memref<32x96xf32, #tpu.memory_space<vmem>>, vector<32x96xf32>
    %cst = arith.constant dense<0.000000e+00> : vector<16x96xf32>
    %2 = tpu.matmul %0, %1, %cst {dimension_numbers = #tpu.dot_dimension_numbers<[1], [0], [0], [1], [0, 0, 1, 1], [], []>} : vector<16x32xf32>, vector<32x96xf32>, vector<16x96xf32> -> vector<16x96xf32>
    %c0_3 = arith.constant 0 : index
    %c0_4 = arith.constant 0 : index
    %3 = vector.load %arg3[%c0_3, %c0_4] : memref<1x96xf32, #tpu.memory_space<vmem>>, vector<1x96xf32>
    %4 = vector.broadcast %3 : vector<1x96xf32> to vector<16x96xf32>
    %5 = arith.addf %2, %4 : vector<16x96xf32>
    %6 = vector.extract_strided_slice %5 {offsets = [0, 0], sizes = [16, 32], strides = [1, 1]} : vector<16x96xf32> to vector<16x32xf32>
    %7 = vector.shape_cast %6 : vector<16x32xf32> to vector<2x8x32xf32>
    %8 = vector.extract_strided_slice %5 {offsets = [0, 32], sizes = [16, 32], strides = [1, 1]} : vector<16x96xf32> to vector<16x32xf32>
    %9 = vector.shape_cast %8 : vector<16x32xf32> to vector<2x8x32xf32>
    %10 = vector.extract_strided_slice %5 {offsets = [0, 64], sizes = [16, 32], strides = [1, 1]} : vector<16x96xf32> to vector<16x32xf32>
    %11 = vector.shape_cast %10 : vector<16x32xf32> to vector<2x8x32xf32>
    %12 = vector.extract_strided_slice %7 {offsets = [0, 0, 0], sizes = [2, 8, 8], strides = [1, 1, 1]} : vector<2x8x32xf32> to vector<2x8x8xf32>
    %13 = vector.extract_strided_slice %9 {offsets = [0, 0, 0], sizes = [2, 8, 8], strides = [1, 1, 1]} : vector<2x8x32xf32> to vector<2x8x8xf32>
    %14 = vector.extract_strided_slice %11 {offsets = [0, 0, 0], sizes = [2, 8, 8], strides = [1, 1, 1]} : vector<2x8x32xf32> to vector<2x8x8xf32>
    %cst_5 = arith.constant dense<0.000000e+00> : vector<2x8x8xf32>
    %15 = tpu.matmul %12, %13, %cst_5 {dimension_numbers = #tpu.dot_dimension_numbers<[2], [2], [1], [1], [0, 0, 0, 1, 1, 1], [0], [0]>} : vector<2x8x8xf32>, vector<2x8x8xf32>, vector<2x8x8xf32> -> vector<2x8x8xf32>
    %cst_6 = arith.constant dense<0xFF800000> : vector<2x8xf32>
    %16 = vector.multi_reduction <maximumf>, %15, %cst_6 [2] : vector<2x8x8xf32> to vector<2x8xf32>
    %17 = vector.shape_cast %16 : vector<2x8xf32> to vector<2x8x1xf32>
    %18 = vector.broadcast %17 : vector<2x8x1xf32> to vector<2x8x8xf32>
    %19 = arith.subf %15, %18 : vector<2x8x8xf32>
    %20 = math.exp %19 : vector<2x8x8xf32>
    %cst_7 = arith.constant dense<0.000000e+00> : vector<2x8xf32>
    %21 = vector.multi_reduction <add>, %20, %cst_7 [2] : vector<2x8x8xf32> to vector<2x8xf32>
    %22 = vector.shape_cast %21 : vector<2x8xf32> to vector<2x8x1xf32>
    %23 = tpu.reciprocal %22 {approx = true} : vector<2x8x1xf32> -> vector<2x8x1xf32>
    %24 = arith.mulf %22, %23 : vector<2x8x1xf32>
    %cst_8 = arith.constant 2.000000e+00 : f32
    %25 = vector.broadcast %cst_8 : f32 to vector<2x8x1xf32>
    %26 = arith.subf %25, %24 : vector<2x8x1xf32>
    %27 = arith.mulf %23, %26 : vector<2x8x1xf32>
    %28 = vector.broadcast %27 : vector<2x8x1xf32> to vector<2x8x8xf32>
    %29 = arith.mulf %20, %28 : vector<2x8x8xf32>
    %cst_9 = arith.constant dense<0.000000e+00> : vector<2x8x8xf32>
    %30 = tpu.matmul %29, %14, %cst_9 {dimension_numbers = #tpu.dot_dimension_numbers<[2], [1], [1], [2], [0, 0, 0, 1, 1, 2], [0], [0]>} : vector<2x8x8xf32>, vector<2x8x8xf32>, vector<2x8x8xf32> -> vector<2x8x8xf32>
    %31 = vector.shape_cast %30 : vector<2x8x8xf32> to vector<16x8xf32>
    %c0_10 = arith.constant 0 : index
    %c0_11 = arith.constant 0 : index
    %32 = vector.load %arg15[%c0_10, %c0_11] : memref<16x32xf32, #tpu.memory_space<vmem>>, vector<16x8xf32>
    tpu.vector_store %arg15[%c0_10, %c0_11], %31 {strides = array<i32>} : memref<16x32xf32, #tpu.memory_space<vmem>>, vector<16x8xf32>,
    %33 = vector.extract_strided_slice %7 {offsets = [0, 0, 8], sizes = [2, 8, 8], strides = [1, 1, 1]} : vector<2x8x32xf32> to vector<2x8x8xf32>
    %34 = vector.extract_strided_slice %9 {offsets = [0, 0, 8], sizes = [2, 8, 8], strides = [1, 1, 1]} : vector<2x8x32xf32> to vector<2x8x8xf32>
    %35 = vector.extract_strided_slice %11 {offsets = [0, 0, 8], sizes = [2, 8, 8], strides = [1, 1, 1]} : vector<2x8x32xf32> to vector<2x8x8xf32>
    %cst_12 = arith.constant dense<0.000000e+00> : vector<2x8x8xf32>
    %36 = tpu.matmul %33, %34, %cst_12 {dimension_numbers = #tpu.dot_dimension_numbers<[2], [2], [1], [1], [0, 0, 0, 1, 1, 1], [0], [0]>} : vector<2x8x8xf32>, vector<2x8x8xf32>, vector<2x8x8xf32> -> vector<2x8x8xf32>
    %cst_13 = arith.constant dense<0xFF800000> : vector<2x8xf32>
    %37 = vector.multi_reduction <maximumf>, %36, %cst_13 [2] : vector<2x8x8xf32> to vector<2x8xf32>
    %38 = vector.shape_cast %37 : vector<2x8xf32> to vector<2x8x1xf32>
    %39 = vector.broadcast %38 : vector<2x8x1xf32> to vector<2x8x8xf32>
    %40 = arith.subf %36, %39 : vector<2x8x8xf32>
    %41 = math.exp %40 : vector<2x8x8xf32>
    %cst_14 = arith.constant dense<0.000000e+00> : vector<2x8xf32>
    %42 = vector.multi_reduction <add>, %41, %cst_14 [2] : vector<2x8x8xf32> to vector<2x8xf32>
    %43 = vector.shape_cast %42 : vector<2x8xf32> to vector<2x8x1xf32>
    %44 = tpu.reciprocal %43 {approx = true} : vector<2x8x1xf32> -> vector<2x8x1xf32>
    %45 = arith.mulf %43, %44 : vector<2x8x1xf32>
    %cst_15 = arith.constant 2.000000e+00 : f32
    %46 = vector.broadcast %cst_15 : f32 to vector<2x8x1xf32>
    %47 = arith.subf %46, %45 : vector<2x8x1xf32>
    %48 = arith.mulf %44, %47 : vector<2x8x1xf32>
    %49 = vector.broadcast %48 : vector<2x8x1xf32> to vector<2x8x8xf32>
    %50 = arith.mulf %41, %49 : vector<2x8x8xf32>
    %cst_16 = arith.constant dense<0.000000e+00> : vector<2x8x8xf32>
    %51 = tpu.matmul %50, %35, %cst_16 {dimension_numbers = #tpu.dot_dimension_numbers<[2], [1], [1], [2], [0, 0, 0, 1, 1, 2], [0], [0]>} : vector<2x8x8xf32>, vector<2x8x8xf32>, vector<2x8x8xf32> -> vector<2x8x8xf32>
    %52 = vector.shape_cast %51 : vector<2x8x8xf32> to vector<16x8xf32>
    %c0_17 = arith.constant 0 : index
    %c8 = arith.constant 8 : index
    %53 = vector.load %arg15[%c0_17, %c8] : memref<16x32xf32, #tpu.memory_space<vmem>>, vector<16x8xf32>
    tpu.vector_store %arg15[%c0_17, %c8], %52 {strides = array<i32>} : memref<16x32xf32, #tpu.memory_space<vmem>>, vector<16x8xf32>,
    %54 = vector.extract_strided_slice %7 {offsets = [0, 0, 16], sizes = [2, 8, 8], strides = [1, 1, 1]} : vector<2x8x32xf32> to vector<2x8x8xf32>
    %55 = vector.extract_strided_slice %9 {offsets = [0, 0, 16], sizes = [2, 8, 8], strides = [1, 1, 1]} : vector<2x8x32xf32> to vector<2x8x8xf32>
    %56 = vector.extract_strided_slice %11 {offsets = [0, 0, 16], sizes = [2, 8, 8], strides = [1, 1, 1]} : vector<2x8x32xf32> to vector<2x8x8xf32>
    %cst_18 = arith.constant dense<0.000000e+00> : vector<2x8x8xf32>
    %57 = tpu.matmul %54, %55, %cst_18 {dimension_numbers = #tpu.dot_dimension_numbers<[2], [2], [1], [1], [0, 0, 0, 1, 1, 1], [0], [0]>} : vector<2x8x8xf32>, vector<2x8x8xf32>, vector<2x8x8xf32> -> vector<2x8x8xf32>
    %cst_19 = arith.constant dense<0xFF800000> : vector<2x8xf32>
    %58 = vector.multi_reduction <maximumf>, %57, %cst_19 [2] : vector<2x8x8xf32> to vector<2x8xf32>
    %59 = vector.shape_cast %58 : vector<2x8xf32> to vector<2x8x1xf32>
    %60 = vector.broadcast %59 : vector<2x8x1xf32> to vector<2x8x8xf32>
    %61 = arith.subf %57, %60 : vector<2x8x8xf32>
    %62 = math.exp %61 : vector<2x8x8xf32>
    %cst_20 = arith.constant dense<0.000000e+00> : vector<2x8xf32>
    %63 = vector.multi_reduction <add>, %62, %cst_20 [2] : vector<2x8x8xf32> to vector<2x8xf32>
    %64 = vector.shape_cast %63 : vector<2x8xf32> to vector<2x8x1xf32>
    %65 = tpu.reciprocal %64 {approx = true} : vector<2x8x1xf32> -> vector<2x8x1xf32>
    %66 = arith.mulf %64, %65 : vector<2x8x1xf32>
    %cst_21 = arith.constant 2.000000e+00 : f32
    %67 = vector.broadcast %cst_21 : f32 to vector<2x8x1xf32>
    %68 = arith.subf %67, %66 : vector<2x8x1xf32>
    %69 = arith.mulf %65, %68 : vector<2x8x1xf32>
    %70 = vector.broadcast %69 : vector<2x8x1xf32> to vector<2x8x8xf32>
    %71 = arith.mulf %62, %70 : vector<2x8x8xf32>
    %cst_22 = arith.constant dense<0.000000e+00> : vector<2x8x8xf32>
    %72 = tpu.matmul %71, %56, %cst_22 {dimension_numbers = #tpu.dot_dimension_numbers<[2], [1], [1], [2], [0, 0, 0, 1, 1, 2], [0], [0]>} : vector<2x8x8xf32>, vector<2x8x8xf32>, vector<2x8x8xf32> -> vector<2x8x8xf32>
    %73 = vector.shape_cast %72 : vector<2x8x8xf32> to vector<16x8xf32>
    %c0_23 = arith.constant 0 : index
    %c16 = arith.constant 16 : index
    %74 = vector.load %arg15[%c0_23, %c16] : memref<16x32xf32, #tpu.memory_space<vmem>>, vector<16x8xf32>
    tpu.vector_store %arg15[%c0_23, %c16], %73 {strides = array<i32>} : memref<16x32xf32, #tpu.memory_space<vmem>>, vector<16x8xf32>,
    %75 = vector.extract_strided_slice %7 {offsets = [0, 0, 24], sizes = [2, 8, 8], strides = [1, 1, 1]} : vector<2x8x32xf32> to vector<2x8x8xf32>
    %76 = vector.extract_strided_slice %9 {offsets = [0, 0, 24], sizes = [2, 8, 8], strides = [1, 1, 1]} : vector<2x8x32xf32> to vector<2x8x8xf32>
    %77 = vector.extract_strided_slice %11 {offsets = [0, 0, 24], sizes = [2, 8, 8], strides = [1, 1, 1]} : vector<2x8x32xf32> to vector<2x8x8xf32>
    %cst_24 = arith.constant dense<0.000000e+00> : vector<2x8x8xf32>
    %78 = tpu.matmul %75, %76, %cst_24 {dimension_numbers = #tpu.dot_dimension_numbers<[2], [2], [1], [1], [0, 0, 0, 1, 1, 1], [0], [0]>} : vector<2x8x8xf32>, vector<2x8x8xf32>, vector<2x8x8xf32> -> vector<2x8x8xf32>
    %cst_25 = arith.constant dense<0xFF800000> : vector<2x8xf32>
    %79 = vector.multi_reduction <maximumf>, %78, %cst_25 [2] : vector<2x8x8xf32> to vector<2x8xf32>
    %80 = vector.shape_cast %79 : vector<2x8xf32> to vector<2x8x1xf32>
    %81 = vector.broadcast %80 : vector<2x8x1xf32> to vector<2x8x8xf32>
    %82 = arith.subf %78, %81 : vector<2x8x8xf32>
    %83 = math.exp %82 : vector<2x8x8xf32>
    %cst_26 = arith.constant dense<0.000000e+00> : vector<2x8xf32>
    %84 = vector.multi_reduction <add>, %83, %cst_26 [2] : vector<2x8x8xf32> to vector<2x8xf32>
    %85 = vector.shape_cast %84 : vector<2x8xf32> to vector<2x8x1xf32>
    %86 = tpu.reciprocal %85 {approx = true} : vector<2x8x1xf32> -> vector<2x8x1xf32>
    %87 = arith.mulf %85, %86 : vector<2x8x1xf32>
    %cst_27 = arith.constant 2.000000e+00 : f32
    %88 = vector.broadcast %cst_27 : f32 to vector<2x8x1xf32>
    %89 = arith.subf %88, %87 : vector<2x8x1xf32>
    %90 = arith.mulf %86, %89 : vector<2x8x1xf32>
    %91 = vector.broadcast %90 : vector<2x8x1xf32> to vector<2x8x8xf32>
    %92 = arith.mulf %83, %91 : vector<2x8x8xf32>
    %cst_28 = arith.constant dense<0.000000e+00> : vector<2x8x8xf32>
    %93 = tpu.matmul %92, %77, %cst_28 {dimension_numbers = #tpu.dot_dimension_numbers<[2], [1], [1], [2], [0, 0, 0, 1, 1, 2], [0], [0]>} : vector<2x8x8xf32>, vector<2x8x8xf32>, vector<2x8x8xf32> -> vector<2x8x8xf32>
    %94 = vector.shape_cast %93 : vector<2x8x8xf32> to vector<16x8xf32>
    %c0_29 = arith.constant 0 : index
    %c24 = arith.constant 24 : index
    %95 = vector.load %arg15[%c0_29, %c24] : memref<16x32xf32, #tpu.memory_space<vmem>>, vector<16x8xf32>
    tpu.vector_store %arg15[%c0_29, %c24], %94 {strides = array<i32>} : memref<16x32xf32, #tpu.memory_space<vmem>>, vector<16x8xf32>,
    %c0_30 = arith.constant 0 : index
    %c0_31 = arith.constant 0 : index
    %96 = vector.load %arg15[%c0_30, %c0_31] : memref<16x32xf32, #tpu.memory_space<vmem>>, vector<16x32xf32>
    %c0_32 = arith.constant 0 : index
    %c0_33 = arith.constant 0 : index
    %97 = vector.load %arg4[%c0_32, %c0_33] : memref<32x32xf32, #tpu.memory_space<vmem>>, vector<32x32xf32>
    %cst_34 = arith.constant dense<0.000000e+00> : vector<16x32xf32>
    %98 = tpu.matmul %96, %97, %cst_34 {dimension_numbers = #tpu.dot_dimension_numbers<[1], [0], [0], [1], [0, 0, 1, 1], [], []>} : vector<16x32xf32>, vector<32x32xf32>, vector<16x32xf32> -> vector<16x32xf32>
    %c0_35 = arith.constant 0 : index
    %c0_36 = arith.constant 0 : index
    %99 = vector.load %arg5[%c0_35, %c0_36] : memref<1x32xf32, #tpu.memory_space<vmem>>, vector<1x32xf32>
    %100 = vector.broadcast %99 : vector<1x32xf32> to vector<16x32xf32>
    %101 = arith.addf %98, %100 : vector<16x32xf32>
    %102 = arith.addf %101, %0 : vector<16x32xf32>
    %c0_37 = arith.constant 0 : index
    %c0_38 = arith.constant 0 : index
    %103 = vector.load %arg6[%c0_37, %c0_38] : memref<1x32xf32, #tpu.memory_space<vmem>>, vector<1x32xf32>
    %c0_39 = arith.constant 0 : index
    %c0_40 = arith.constant 0 : index
    %104 = vector.load %arg7[%c0_39, %c0_40] : memref<1x32xf32, #tpu.memory_space<vmem>>, vector<1x32xf32>
    %cst_41 = arith.constant dense<0.000000e+00> : vector<16xf32>
    %105 = vector.multi_reduction <add>, %102, %cst_41 [1] : vector<16x32xf32> to vector<16xf32>
    %106 = vector.shape_cast %105 : vector<16xf32> to vector<16x1xf32>
    %cst_42 = arith.constant 3.200000e+01 : f32
    %107 = vector.broadcast %cst_42 : f32 to vector<16x1xf32>
    %108 = arith.divf %106, %107 : vector<16x1xf32>
    %109 = vector.broadcast %108 : vector<16x1xf32> to vector<16x32xf32>
    %110 = arith.subf %102, %109 : vector<16x32xf32>
    %111 = arith.mulf %110, %110 : vector<16x32xf32>
    %cst_43 = arith.constant dense<0.000000e+00> : vector<16xf32>
    %112 = vector.multi_reduction <add>, %111, %cst_43 [1] : vector<16x32xf32> to vector<16xf32>
    %113 = vector.shape_cast %112 : vector<16xf32> to vector<16x1xf32>
    %cst_44 = arith.constant 3.200000e+01 : f32
    %114 = vector.broadcast %cst_44 : f32 to vector<16x1xf32>
    %115 = arith.divf %113, %114 : vector<16x1xf32>
    %cst_45 = arith.constant 1.000000e-10 : f32
    %116 = vector.broadcast %cst_45 : f32 to vector<16x1xf32>
    %117 = arith.addf %115, %116 : vector<16x1xf32>
    %118 = math.rsqrt %117 : vector<16x1xf32>
    %119 = vector.broadcast %118 : vector<16x1xf32> to vector<16x32xf32>
    %120 = arith.mulf %110, %119 : vector<16x32xf32>
    %121 = vector.broadcast %103 : vector<1x32xf32> to vector<16x32xf32>
    %122 = arith.mulf %121, %120 : vector<16x32xf32>
    %123 = vector.broadcast %104 : vector<1x32xf32> to vector<16x32xf32>
    %124 = arith.addf %122, %123 : vector<16x32xf32>
    %c0_46 = arith.constant 0 : index
    %c0_47 = arith.constant 0 : index
    %125 = vector.load %arg8[%c0_46, %c0_47] : memref<32x64xf32, #tpu.memory_space<vmem>>, vector<32x64xf32>
    %cst_48 = arith.constant dense<0.000000e+00> : vector<16x64xf32>
    %126 = tpu.matmul %124, %125, %cst_48 {dimension_numbers = #tpu.dot_dimension_numbers<[1], [0], [0], [1], [0, 0, 1, 1], [], []>} : vector<16x32xf32>, vector<32x64xf32>, vector<16x64xf32> -> vector<16x64xf32>
    %c0_49 = arith.constant 0 : index
    %c0_50 = arith.constant 0 : index
    %127 = vector.load %arg9[%c0_49, %c0_50] : memref<1x64xf32, #tpu.memory_space<vmem>>, vector<1x64xf32>
    %128 = vector.broadcast %127 : vector<1x64xf32> to vector<16x64xf32>
    %129 = arith.addf %126, %128 : vector<16x64xf32>
    %cst_51 = arith.constant 0.000000e+00 : f32
    %130 = vector.broadcast %cst_51 : f32 to vector<16x64xf32>
    %131 = arith.maximumf %129, %130 : vector<16x64xf32>
    %c0_52 = arith.constant 0 : index
    %c0_53 = arith.constant 0 : index
    %132 = vector.load %arg10[%c0_52, %c0_53] : memref<64x32xf32, #tpu.memory_space<vmem>>, vector<64x32xf32>
    %cst_54 = arith.constant dense<0.000000e+00> : vector<16x32xf32>
    %133 = tpu.matmul %131, %132, %cst_54 {dimension_numbers = #tpu.dot_dimension_numbers<[1], [0], [0], [1], [0, 0, 1, 1], [], []>} : vector<16x64xf32>, vector<64x32xf32>, vector<16x32xf32> -> vector<16x32xf32>
    %c0_55 = arith.constant 0 : index
    %c0_56 = arith.constant 0 : index
    %134 = vector.load %arg11[%c0_55, %c0_56] : memref<1x32xf32, #tpu.memory_space<vmem>>, vector<1x32xf32>
    %135 = vector.broadcast %134 : vector<1x32xf32> to vector<16x32xf32>
    %136 = arith.addf %133, %135 : vector<16x32xf32>
    %137 = arith.addf %136, %124 : vector<16x32xf32>
    %c0_57 = arith.constant 0 : index
    %c0_58 = arith.constant 0 : index
    %138 = vector.load %arg12[%c0_57, %c0_58] : memref<1x32xf32, #tpu.memory_space<vmem>>, vector<1x32xf32>
    %c0_59 = arith.constant 0 : index
    %c0_60 = arith.constant 0 : index
    %139 = vector.load %arg13[%c0_59, %c0_60] : memref<1x32xf32, #tpu.memory_space<vmem>>, vector<1x32xf32>
    %cst_61 = arith.constant dense<0.000000e+00> : vector<16xf32>
    %140 = vector.multi_reduction <add>, %137, %cst_61 [1] : vector<16x32xf32> to vector<16xf32>
    %141 = vector.shape_cast %140 : vector<16xf32> to vector<16x1xf32>
    %cst_62 = arith.constant 3.200000e+01 : f32
    %142 = vector.broadcast %cst_62 : f32 to vector<16x1xf32>
    %143 = arith.divf %141, %142 : vector<16x1xf32>
    %144 = vector.broadcast %143 : vector<16x1xf32> to vector<16x32xf32>
    %145 = arith.subf %137, %144 : vector<16x32xf32>
    %146 = arith.mulf %145, %145 : vector<16x32xf32>
    %cst_63 = arith.constant dense<0.000000e+00> : vector<16xf32>
    %147 = vector.multi_reduction <add>, %146, %cst_63 [1] : vector<16x32xf32> to vector<16xf32>
    %148 = vector.shape_cast %147 : vector<16xf32> to vector<16x1xf32>
    %cst_64 = arith.constant 3.200000e+01 : f32
    %149 = vector.broadcast %cst_64 : f32 to vector<16x1xf32>
    %150 = arith.divf %148, %149 : vector<16x1xf32>
    %cst_65 = arith.constant 1.000000e-10 : f32
    %151 = vector.broadcast %cst_65 : f32 to vector<16x1xf32>
    %152 = arith.addf %150, %151 : vector<16x1xf32>
    %153 = math.rsqrt %152 : vector<16x1xf32>
    %154 = vector.broadcast %153 : vector<16x1xf32> to vector<16x32xf32>
    %155 = arith.mulf %145, %154 : vector<16x32xf32>
    %156 = vector.broadcast %138 : vector<1x32xf32> to vector<16x32xf32>
    %157 = arith.mulf %156, %155 : vector<16x32xf32>
    %158 = vector.broadcast %139 : vector<1x32xf32> to vector<16x32xf32>
    %159 = arith.addf %157, %158 : vector<16x32xf32>
    %c0_66 = arith.constant 0 : index
    %c0_67 = arith.constant 0 : index
    %160 = vector.load %arg14[%c0_66, %c0_67] : memref<16x32xf32, #tpu.memory_space<vmem>>, vector<16x32xf32>
    tpu.vector_store %arg14[%c0_66, %c0_67], %159 {strides = array<i32>} : memref<16x32xf32, #tpu.memory_space<vmem>>, vector<16x32xf32>,
    return
  }
  func.func @transform_0(%arg0: i32) -> (i32, i32) {
    %c0_i32 = arith.constant 0 : i32
    %c0_i32_0 = arith.constant 0 : i32
    return %arg0, %c0_i32 : i32, i32
  }
  func.func @transform_1(%arg0: i32) -> (i32, i32) {
    %c0_i32 = arith.constant 0 : i32
    %c0_i32_0 = arith.constant 0 : i32
    %c0_i32_1 = arith.constant 0 : i32
    return %c0_i32, %c0_i32_0 : i32, i32
  }
  func.func @transform_2(%arg0: i32) -> (i32, i32) {
    %c0_i32 = arith.constant 0 : i32
    %c0_i32_0 = arith.constant 0 : i32
    %c0_i32_1 = arith.constant 0 : i32
    return %c0_i32, %c0_i32_0 : i32, i32
  }
  func.func @transform_3(%arg0: i32) -> (i32, i32) {
    %c0_i32 = arith.constant 0 : i32
    %c0_i32_0 = arith.constant 0 : i32
    %c0_i32_1 = arith.constant 0 : i32
    return %c0_i32, %c0_i32_0 : i32, i32
  }
  func.func @transform_4(%arg0: i32) -> (i32, i32) {
    %c0_i32 = arith.constant 0 : i32
    %c0_i32_0 = arith.constant 0 : i32
    %c0_i32_1 = arith.constant 0 : i32
    return %c0_i32, %c0_i32_0 : i32, i32
  }
  func.func @transform_5(%arg0: i32) -> (i32, i32) {
    %c0_i32 = arith.constant 0 : i32
    %c0_i32_0 = arith.constant 0 : i32
    %c0_i32_1 = arith.constant 0 : i32
    return %c0_i32, %c0_i32_0 : i32, i32
  }
  func.func @transform_6(%arg0: i32) -> (i32, i32) {
    %c0_i32 = arith.constant 0 : i32
    %c0_i32_0 = arith.constant 0 : i32
    %c0_i32_1 = arith.constant 0 : i32
    return %c0_i32, %c0_i32_0 : i32, i32
  }
  func.func @transform_7(%arg0: i32) -> (i32, i32) {
    %c0_i32 = arith.constant 0 : i32
    %c0_i32_0 = arith.constant 0 : i32
    %c0_i32_1 = arith.constant 0 : i32
    return %c0_i32, %c0_i32_0 : i32, i32
  }
  func.func @transform_8(%arg0: i32) -> (i32, i32) {
    %c0_i32 = arith.constant 0 : i32
    %c0_i32_0 = arith.constant 0 : i32
    %c0_i32_1 = arith.constant 0 : i32
    return %c0_i32, %c0_i32_0 : i32, i32
  }
  func.func @transform_9(%arg0: i32) -> (i32, i32) {
    %c0_i32 = arith.constant 0 : i32
    %c0_i32_0 = arith.constant 0 : i32
    %c0_i32_1 = arith.constant 0 : i32
    return %c0_i32, %c0_i32_0 : i32, i32
  }
  func.func @transform_10(%arg0: i32) -> (i32, i32) {
    %c0_i32 = arith.constant 0 : i32
    %c0_i32_0 = arith.constant 0 : i32
    %c0_i32_1 = arith.constant 0 : i32
    return %c0_i32, %c0_i32_0 : i32, i32
  }
  func.func @transform_11(%arg0: i32) -> (i32, i32) {
    %c0_i32 = arith.constant 0 : i32
    %c0_i32_0 = arith.constant 0 : i32
    %c0_i32_1 = arith.constant 0 : i32
    return %c0_i32, %c0_i32_0 : i32, i32
  }
  func.func @transform_12(%arg0: i32) -> (i32, i32) {
    %c0_i32 = arith.constant 0 : i32
    %c0_i32_0 = arith.constant 0 : i32
    %c0_i32_1 = arith.constant 0 : i32
    return %c0_i32, %c0_i32_0 : i32, i32
  }
  func.func @transform_13(%arg0: i32) -> (i32, i32) {
    %c0_i32 = arith.constant 0 : i32
    %c0_i32_0 = arith.constant 0 : i32
    return %arg0, %c0_i32 : i32, i32
  }
}

</mosaic_0001>

<bundles_post_ra>
// kernel: tpu_custom_call.1
= control target key start
LH: loop header
LB: loop body
LE: loop exit
PB: predicated region body
PF: predicated region fallthrough
CT: control target
= control target key end

     0   :  { %18 = vsyncpa [#allocation4], 0  ;;  %s2601_s0 = inlined_call_operand.hbm [shape: f32[16,32], index: 0, kind: input, shape index: {}]   ;;  %s2602_s1 = inlined_call_operand.vmem [shape: f32[32,96], index: 1, kind: input, shape index: {}]   ;;  %s2603_s2 = inlined_call_operand.vmem [shape: f32[1,96], index: 2, kind: input, shape index: {}]   ;;  %s2604_s3 = inlined_call_operand.vmem [shape: f32[32,32], index: 3, kind: input, shape index: {}]   ;;  %s2605_s4 = inlined_call_operand.vmem [shape: f32[1,32], index: 4, kind: input, shape index: {}]   ;;  %s2606_s5 = inlined_call_operand.vmem [shape: f32[1,32], index: 5, kind: input, shape index: {}]   ;;  %s2607_s6 = inlined_call_operand.vmem [shape: f32[1,32], index: 6, kind: input, shape index: {}]   ;;  %s2608_s7 = inlined_call_operand.vmem [shape: f32[32,64], index: 7, kind: input, shape index: {}]   ;;  %s2609_s8 = inlined_call_operand.vmem [shape: f32[1,64], index: 8, kind: input, shape index: {}]   ;;  %s2610_s9 = inlined_call_operand.vmem [shape: f32[64,32], index: 9, kind: input, shape index: {}]   ;;  %s2611_s10 = inlined_call_operand.vmem [shape: f32[1,32], index: 10, kind: input, shape index: {}]   ;;  %s2612_s11 = inlined_call_operand.vmem [shape: f32[1,32], index: 11, kind: input, shape index: {}]   ;;  %s2613_s12 = inlined_call_operand.vmem [shape: f32[1,32], index: 12, kind: input, shape index: {}]   ;;  %s2614_s13 = inlined_call_operand.hbm [shape: f32[16,32], index: 13, kind: output, shape index: {}]  }
   0x1   :  { %19 = vsyncpa [#allocation5], 0  ;;  %s2264_s25 = smov [#allocation3]  }
   0x2   :  { %s25_s26 = sshll.u32 %s2264_s25, 4  ;;  %s26_s26 = int_to_ptr.vmem [resolvable:$true] %s25_s26 }
   0x3   :  { %s2228_s27 = scalar_lea.vmem %s26_s26, 256  ;;  %p2233_p1 = scmp.lt.s32.totalorder %s26_s26, %s26_s26 }
   0x4   :  { %p2229_p0 = scmp.ne.s32.totalorder %s26_s26, %s2228_s27  ;;  %p2234_p2 = scmp.lt.s32.totalorder %s2228_s27, %s2228_s27 }
   0x6   :  { %p2235_p3 = por %p2234_p2, %p2233_p1 }
   0x8   :  { %p2236_p4 = pnand %p2235_p3, %p2229_p0 }
   0xa   :  { %2239 = shalt.err (!%p2236_p4)
}
   0xb   :  { %s2265_s28 = smov 128   ;;  %s2266_s29 = smov 8  }
   0xc   :  { %31 = dma.hbm_to_vmem [thread:$0]  %s2601_s0, 256, %s26_s26, [#allocation4], %s2265_s28, %s2265_s28, %s2266_s29  }
   0xd   :  { %2260 = dma.done.wait [#allocation4], 256  }
   0xe   :  { %2261 = vsyncadd [#allocation4], 4294967040  ;;  %vm72_vm0 = vcmask 261120   ;;  %v64_v0 = vld [vmem:[%s2602_s1 + $0x18] sm:$0xff]  ;;  %v63_v1 = vld [vmem:[%s2602_s1 + $0x10] sm:$0xff]  ;;  %v2267_v6 = vmov 0.0  }
   0xf   :  { %2029 = vmatprep.subr.mxu1 %v64_v0  ;;  %v2365_v2 = vld [vmem:[#allocation3] sm:$0xff]  ;;  %v62_v3 = vld [vmem:[%s2602_s1 + $0x8] sm:$0xff]  ;;  %v61_v4 = vld [vmem:[%s2602_s1] sm:$0xff]  ;;  %2050 = vmatprep.subr.mxu0 %v2267_v6  ;;  %vm2268_vm1 = vmmov 0   ;;  %s2269_s23 = smov 96   ;;  %vm157_vm2 = vcmask 64512  }
  0x10   :  { %2030 = vmatpush3.msra.mxu1 %v64_v0  ;;  %2037 = vmatprep.mubr.msk.f32.mxu1 %vm72_vm0, %v2365_v2  ;;  %v2375_v5 = vld [vmem:[#allocation3 + $0x8] sm:$0xff]  ;;  %v1929_v8 = vld [vmem:[%s2603_s2] ss:$0 sm:$0xff]  ;;  %s2270_s2 = smov 64   ;;  %s2271_s24 = smov 88   ;;  %vm835_vm3 = vcmask 130112  }
  0x11   :  { %2031 = vmatprep.subr.mxu1 %v63_v1  ;;  %2052 = vmatprep.mubr.msk.f32.mxu0 %vm2268_vm1, %v2267_v6  ;;  %s2272_s25 = smov 120   ;;  %s2273_s26 = smov 56   ;;  %vm1182_vm4 = vcmask 195712   ;;  %vm1529_vm5 = vcmask 261312   ;;  %vm1782_vm6 = vcmask 523264  }
  0x12   :  { %2032 = vmatpush3.msra.mxu1 %v63_v1  ;;  %s2274_s27 = smov 80   ;;  %s2275_s30 = smov 112  }
  0x13   :  { %2033 = vmatprep.subr.mxu1 %v62_v3  ;;  %s2276_s14 = smov 48   ;;  %s2277_s15 = smov 72  }
  0x14   :  { %2034 = vmatpush3.msra.mxu1 %v62_v3  ;;  %s2278_s16 = smov 104   ;;  %s2279_s17 = smov 40  }
  0x15   :  { %2035 = vmatprep.subr.mxu1 %v61_v4  ;;  %s2280_s18 = smov 16   ;;  %s2282_s20 = smov [#allocation6]  }
  0x16   :  { %2036 = vmatpush3.msra.mxu1 %v61_v4  ;;  %s1917_s0 = sshll.u32 %s2282_s20, 4  ;;  %s1918_s0 = int_to_ptr.vmem [resolvable:$true] %s1917_s0 }
  0x17   :  { %2038 = vmatmul.mubr.msk.f32.vlgmr.msra.gmra.mxu1 %vm72_vm0, %v2375_v5  ;;  %2040 = vmatprep.subr.mxu1 %v2267_v6  ;;  %s2240_s21 = scalar_lea.vmem %s1918_s0, 256  ;;  %p2245_p6 = scmp.lt.s32.totalorder %s1918_s0, %s1918_s0 }
  0x18   :  { %2042 = vmatprep.mubr.msk.f32.mxu1 %vm2268_vm1, %v2267_v6  ;;  %p2241_p5 = scmp.ne.s32.totalorder %s1918_s0, %s2240_s21  ;;  %p2246_p7 = scmp.lt.s32.totalorder %s2240_s21, %s2240_s21 }
  0x1a   :  { %p2247_p8 = por %p2246_p7, %p2245_p6 }
  0x1c   :  { %p2248_p9 = pnand %p2247_p8, %p2241_p5 }
  0xd7   :  { %v2039_v7 = vpop.f32.mrf.mxu1 }
  0xd8   :  { %v2391_v11 = vadd.f32 %v2039_v7, %v1929_v8 }
  0xd9   :  { %v145_v9 = vpop.f32.mrf.mxu1 }
  0xda   :  { %v2388_v10 = vadd.f32 %v1929_v8, %v145_v9 }
  0xdc   :  { %155 = vrot.lane.b32.xlu0 %v2388_v10, %s2269_s23 }
  0xe0   :  { %233 = vrot.lane.b32.xlu0 %v2391_v11, %s2269_s23 }
 0x14e   :  { %v156_v12 = vpop.permute.xlu0 %155 }
 0x14f   :  { %2041 = vmatpush3.xpose.msk.msra.mxu1 %vm157_vm2, %v156_v12 }
 0x150   :  { %2045 = vmatprep.subr.mxu1 %v2267_v6 }
 0x152   :  { %2043 = vmatmul.mubr.msk.f32.vlgmr.msra.gmra.mxu1 %vm157_vm2, %v2388_v10  ;;  %v234_v13 = vpop.permute.xlu0 %233 }
 0x153   :  { %2046 = vmatpush3.xpose.msk.msra.mxu1 %vm157_vm2, %v234_v13  ;;  %2047 = vmatprep.mubr.msk.f32.mxu1 %vm2268_vm1, %v2267_v6 }
 0x154   :  { %2055 = vmatprep.subr.mxu1 %v2267_v6 }
 0x156   :  { %2048 = vmatmul.mubr.msk.f32.vlgmr.msra.gmra.mxu1 %vm157_vm2, %v2391_v11 }
 0x157   :  { %2057 = vmatprep.mubr.msk.f32.mxu1 %vm2268_vm1, %v2267_v6 }
 0x212   :  { %v228_v14 = vpop.f32.mrf.mxu1 }
 0x213   :  { %v309_v15 = vsel %vm157_vm2, %v228_v14, -inf }
 0x214   :  { %310 = vmax.xlane.f32.xlu1 %v309_v15  ;;  %v2044_v16 = vpop.f32.mrf.mxu1 }
 0x216   :  { %v305_v17 = vpop.f32.mrf.mxu1 }
 0x217   :  { %v312_v18 = vsel %vm157_vm2, %v305_v17, -inf }
 0x218   :  { %313 = vmax.xlane.f32.xlu1 %v312_v18  ;;  %v2049_v19 = vpop.f32.mrf.mxu1 }
 0x229   :  { %337 = vrot.lane.b32.xlu1 %v2388_v10, %s2270_s2 }
 0x22d   :  { %413 = vrot.lane.b32.xlu1 %v2391_v11, %s2270_s2 }
 0x231   :  { %493 = vrot.lane.b32.xlu1 %v2388_v10, %s2271_s24 }
 0x29d   :  { %v311_v20 = vpop.xlane.xlu1 %310 }
 0x29e   :  { %v315_v21 = vsub.f32 %v228_v14, %v311_v20 }
 0x2a0   :  { %v317_v22 = vmul.f32 1.442695, %v315_v21 }
 0x2a1   :  { %v314_v23 = vpop.xlane.xlu1 %313 }
 0x2a2   :  { %2180 = vpow2.f32 %v317_v22  ;;  %v316_v24 = vsub.f32 %v305_v17, %v314_v23 }
 0x2a4   :  { %v319_v25 = vmul.f32 1.442695, %v316_v24 }
 0x2a5   :  { %v338_v26 = vpop.permute.xlu1 %337 }
 0x2a6   :  { %2182 = vpow2.f32 %v319_v25  ;;  %2051 = vmatpush3.msra.mxu0 %v338_v26 }
 0x2a7   :  { %2060 = vmatprep.subr.mxu0 %v2267_v6 }
 0x2a9   :  { %v414_v27 = vpop.permute.xlu1 %413 }
 0x2aa   :  { %2056 = vmatpush3.msra.mxu1 %v414_v27 }
 0x2ab   :  { %2065 = vmatprep.subr.mxu1 %v2267_v6 }
 0x2ad   :  { %v494_v32 = vpop.permute.xlu1 %493 }
 0x2af   :  { %v2181_v28 = vpop.eup %2180 }
 0x2b0   :  { %v321_v29 = vsel %vm157_vm2, %v2181_v28, 0.0 }
 0x2b1   :  { %322 = vadd.xlane.f32.xlu0 %v321_v29 }
 0x2b3   :  { %v2183_v30 = vpop.eup %2182 }
 0x2b4   :  { %v324_v31 = vsel %vm157_vm2, %v2183_v30, 0.0 }
 0x2b5   :  { %325 = vadd.xlane.f32.xlu1 %v324_v31 }
 0x2c6   :  { %571 = vrot.lane.b32.xlu1 %v2391_v11, %s2271_s24  ;;  %s2281_s24 = smov 24  }
 0x2c7   :  { %491 = vrot.lane.b32.xlu0 %v2388_v10, %s2272_s25 }
 0x2ca   :  { %569 = vrot.lane.b32.xlu1 %v2391_v11, %s2272_s25 }
 0x33a   :  { %v323_v33 = vpop.xlane.xlu0 %322 }
 0x33b   :  { %2184 = vrcp.f32 %v323_v33 }
 0x33e   :  { %v326_v34 = vpop.xlane.xlu1 %325  ;;  %v492_v46 = vpop.permute.xlu0 %491 }
 0x33f   :  { %2186 = vrcp.f32 %v326_v34 }
 0x342   :  { %v572_v44 = vpop.permute.xlu1 %571 }
 0x346   :  { %v570_v47 = vpop.permute.xlu1 %569 }
 0x348   :  { %v2185_v35 = vpop.eup %2184 }
 0x349   :  { %v329_v36 = vmul.f32 %v2185_v35, %v323_v33 }
 0x34b   :  { %v331_v37 = vsub.f32 2.0, %v329_v36 }
 0x34c   :  { %v2187_v38 = vpop.eup %2186 }
 0x34d   :  { %v333_v39 = vmul.f32 %v2185_v35, %v331_v37  ;;  %v330_v40 = vmul.f32 %v2187_v38, %v326_v34 }
 0x34f   :  { %v335_v41 = vmul.f32 %v2181_v28, %v333_v39  ;;  %v332_v42 = vsub.f32 2.0, %v330_v40 }
 0x351   :  { %v334_v43 = vmul.f32 %v2187_v38, %v332_v42  ;;  %2053 = vmatmul.mubr.msk.f32.vlgmr.msra.gmra.mxu0 %vm157_vm2, %v335_v41 }
 0x352   :  { %2061 = vmatpush3.xpose.msk.msra.mxu0 %vm157_vm2, %v494_v32  ;;  %2062 = vmatprep.mubr.msk.f32.mxu0 %vm2268_vm1, %v2267_v6 }
 0x353   :  { %v336_v45 = vmul.f32 %v2183_v30, %v334_v43  ;;  %2070 = vmatprep.subr.mxu0 %v2267_v6 }
 0x355   :  { %2058 = vmatmul.mubr.msk.f32.vlgmr.msra.gmra.mxu1 %vm157_vm2, %v336_v45  ;;  %2063 = vmatmul.mubr.msk.f32.vlgmr.msra.gmra.mxu0 %vm157_vm2, %v492_v46 }
 0x356   :  { %2066 = vmatpush3.xpose.msk.msra.mxu1 %vm157_vm2, %v572_v44  ;;  %2067 = vmatprep.mubr.msk.f32.mxu1 %vm2268_vm1, %v2267_v6 }
 0x357   :  { %2075 = vmatprep.subr.mxu1 %v2267_v6  ;;  %2072 = vmatprep.mubr.msk.f32.mxu0 %vm2268_vm1, %v2267_v6 }
 0x359   :  { %2068 = vmatmul.mubr.msk.f32.vlgmr.msra.gmra.mxu1 %vm157_vm2, %v570_v47 }
 0x35a   :  { %2077 = vmatprep.mubr.msk.f32.mxu1 %vm2268_vm1, %v2267_v6 }
 0x411   :  { %v409_v48 = vpop.f32.mrf.mxu0 }
 0x412   :  { %489 = vst.msk [vmem:[#allocation2] sm:$0xff] %vm157_vm2, %v409_v48 }
 0x413   :  { %v2054_v49 = vpop.f32.mrf.mxu0 }
 0x415   :  { %v485_v50 = vpop.f32.mrf.mxu1  ;;  %v565_v51 = vpop.f32.mrf.mxu0 }
 0x416   :  { %490 = vst.msk [vmem:[#allocation2 + $0x8] sm:$0xff] %vm157_vm2, %v485_v50  ;;  %v647_v52 = vsel %vm157_vm2, %v565_v51, -inf }
 0x417   :  { %v2059_v53 = vpop.f32.mrf.mxu1  ;;  %648 = vmax.xlane.f32.xlu1 %v647_v52  ;;  %v2064_v54 = vpop.f32.mrf.mxu0 }
 0x419   :  { %v643_v55 = vpop.f32.mrf.mxu1 }
 0x41a   :  { %v650_v56 = vsel %vm157_vm2, %v643_v55, -inf }
 0x41b   :  { %651 = vmax.xlane.f32.xlu0 %v650_v56  ;;  %v2069_v57 = vpop.f32.mrf.mxu1 }
 0x428   :  { %675 = vrot.lane.b32.xlu1 %v2388_v10, %s2273_s26 }
 0x42c   :  { %840 = vrot.lane.b32.xlu1 %v2388_v10, %s2274_s27 }
 0x431   :  { %751 = vrot.lane.b32.xlu0 %v2391_v11, %s2273_s26 }
 0x435   :  { %838 = vrot.lane.b32.xlu0 %v2388_v10, %s2275_s30 }
 0x4a0   :  { %v649_v58 = vpop.xlane.xlu1 %648 }
 0x4a1   :  { %v653_v59 = vsub.f32 %v565_v51, %v649_v58 }
 0x4a3   :  { %v655_v60 = vmul.f32 1.442695, %v653_v59 }
 0x4a4   :  { %v676_v61 = vpop.permute.xlu1 %675  ;;  %v652_v62 = vpop.xlane.xlu0 %651 }
 0x4a5   :  { %2188 = vpow2.f32 %v655_v60  ;;  %v654_v63 = vsub.f32 %v643_v55, %v652_v62  ;;  %2071 = vmatpush3.msra.mxu0 %v676_v61 }
 0x4a6   :  { %2080 = vmatprep.subr.mxu0 %v2267_v6 }
 0x4a7   :  { %v657_v0 = vmul.f32 1.442695, %v654_v63 }
 0x4a8   :  { %v752_v1 = vpop.permute.xlu0 %751  ;;  %v841_v9 = vpop.permute.xlu1 %840 }
 0x4a9   :  { %2190 = vpow2.f32 %v657_v0  ;;  %2076 = vmatpush3.msra.mxu1 %v752_v1 }
 0x4aa   :  { %2085 = vmatprep.subr.mxu1 %v2267_v6 }
 0x4ac   :  { %v839_v25 = vpop.permute.xlu0 %838 }
 0x4b2   :  { %v2189_v3 = vpop.eup %2188 }
 0x4b3   :  { %v659_v4 = vsel %vm157_vm2, %v2189_v3, 0.0 }
 0x4b4   :  { %660 = vadd.xlane.f32.xlu1 %v659_v4 }
 0x4b6   :  { %v2191_v7 = vpop.eup %2190 }
 0x4b7   :  { %v662_v8 = vsel %vm157_vm2, %v2191_v7, 0.0 }
 0x4b8   :  { %663 = vadd.xlane.f32.xlu1 %v662_v8 }
 0x4c9   :  { %918 = vrot.lane.b32.xlu1 %v2391_v11, %s2274_s27 }
 0x4cd   :  { %916 = vrot.lane.b32.xlu1 %v2391_v11, %s2275_s30 }
 0x53d   :  { %v661_v12 = vpop.xlane.xlu1 %660 }
 0x53e   :  { %2192 = vrcp.f32 %v661_v12 }
 0x541   :  { %v664_v13 = vpop.xlane.xlu1 %663 }
 0x542   :  { %2194 = vrcp.f32 %v664_v13 }
 0x545   :  { %v919_v23 = vpop.permute.xlu1 %918 }
 0x549   :  { %v917_v26 = vpop.permute.xlu1 %916 }
 0x54b   :  { %v2193_v14 = vpop.eup %2192 }
 0x54c   :  { %v667_v15 = vmul.f32 %v2193_v14, %v661_v12 }
 0x54e   :  { %v669_v16 = vsub.f32 2.0, %v667_v15 }
 0x54f   :  { %v2195_v17 = vpop.eup %2194 }
 0x550   :  { %v671_v18 = vmul.f32 %v2193_v14, %v669_v16  ;;  %v668_v19 = vmul.f32 %v2195_v17, %v664_v13 }
 0x552   :  { %v673_v20 = vmul.f32 %v2189_v3, %v671_v18  ;;  %v670_v21 = vsub.f32 2.0, %v668_v19 }
 0x554   :  { %v672_v22 = vmul.f32 %v2195_v17, %v670_v21  ;;  %2073 = vmatmul.mubr.msk.f32.vlgmr.msra.gmra.mxu0 %vm157_vm2, %v673_v20 }
 0x555   :  { %2081 = vmatpush3.xpose.msk.msra.mxu0 %vm157_vm2, %v841_v9  ;;  %2082 = vmatprep.mubr.msk.f32.mxu0 %vm2268_vm1, %v2267_v6 }
 0x556   :  { %v674_v24 = vmul.f32 %v2191_v7, %v672_v22  ;;  %2090 = vmatprep.subr.mxu0 %v2267_v6 }
 0x558   :  { %2078 = vmatmul.mubr.msk.f32.vlgmr.msra.gmra.mxu1 %vm157_vm2, %v674_v24  ;;  %2083 = vmatmul.mubr.msk.f32.vlgmr.msra.gmra.mxu0 %vm157_vm2, %v839_v25 }
 0x559   :  { %2086 = vmatpush3.xpose.msk.msra.mxu1 %vm157_vm2, %v919_v23  ;;  %2087 = vmatprep.mubr.msk.f32.mxu1 %vm2268_vm1, %v2267_v6 }
 0x55a   :  { %2095 = vmatprep.subr.mxu1 %v2267_v6  ;;  %2092 = vmatprep.mubr.msk.f32.mxu0 %vm2268_vm1, %v2267_v6 }
 0x55c   :  { %2088 = vmatmul.mubr.msk.f32.vlgmr.msra.gmra.mxu1 %vm157_vm2, %v917_v26 }
 0x55d   :  { %2097 = vmatprep.mubr.msk.f32.mxu1 %vm2268_vm1, %v2267_v6 }
 0x614   :  { %v2464_v27 = vpop.f32.mrf.mxu0 }
 0x616   :  { %v2074_v28 = vpop.f32.mrf.mxu0 }
 0x618   :  { %v2466_v29 = vpop.f32.mrf.mxu1  ;;  %v912_v30 = vpop.f32.mrf.mxu0 }
 0x619   :  { %v994_v31 = vsel %vm157_vm2, %v912_v30, -inf }
 0x61a   :  { %v2079_v32 = vpop.f32.mrf.mxu1  ;;  %995 = vmax.xlane.f32.xlu0 %v994_v31  ;;  %v2084_v33 = vpop.f32.mrf.mxu0 }
 0x61c   :  { %v990_v34 = vpop.f32.mrf.mxu1 }
 0x61d   :  { %v997_v35 = vsel %vm157_vm2, %v990_v34, -inf }
 0x61e   :  { %998 = vmax.xlane.f32.xlu1 %v997_v35  ;;  %v2089_v36 = vpop.f32.mrf.mxu1 }
 0x62f   :  { %1022 = vrot.lane.b32.xlu1 %v2388_v10, %s2276_s14 }
 0x633   :  { %1187 = vrot.lane.b32.xlu1 %v2388_v10, %s2277_s15 }
 0x637   :  { %1265 = vrot.lane.b32.xlu1 %v2391_v11, %s2277_s15 }
 0x63b   :  { %1263 = vrot.lane.b32.xlu1 %v2391_v11, %s2278_s16 }
 0x6a3   :  { %v996_v37 = vpop.xlane.xlu0 %995 }
 0x6a4   :  { %v1000_v38 = vsub.f32 %v912_v30, %v996_v37 }
 0x6a6   :  { %v1002_v39 = vmul.f32 1.442695, %v1000_v38 }
 0x6a7   :  { %v999_v40 = vpop.xlane.xlu1 %998 }
 0x6a8   :  { %2196 = vpow2.f32 %v1002_v39  ;;  %v1001_v41 = vsub.f32 %v990_v34, %v999_v40 }
 0x6aa   :  { %v1004_v42 = vmul.f32 1.442695, %v1001_v41  ;;  %v1537_v41 = vld [vmem:[%s2604_s3 + $0x18] sm:$0xff] }
 0x6ab   :  { %v1023_v43 = vpop.permute.xlu1 %1022 }
 0x6ac   :  { %2198 = vpow2.f32 %v1004_v42  ;;  %2091 = vmatpush3.msra.mxu0 %v1023_v43  ;;  %v1536_v42 = vld [vmem:[%s2604_s3 + $0x10] sm:$0xff]  ;;  %v1535_v43 = vld [vmem:[%s2604_s3 + $0x8] sm:$0xff] }
 0x6ad   :  { %2100 = vmatprep.subr.mxu0 %v2267_v6 }
 0x6af   :  { %v1188_v55 = vpop.permute.xlu1 %1187 }
 0x6b3   :  { %v1266_v61 = vpop.permute.xlu1 %1265 }
 0x6b5   :  { %v2197_v44 = vpop.eup %2196 }
 0x6b6   :  { %v1006_v45 = vsel %vm157_vm2, %v2197_v44, 0.0 }
 0x6b7   :  { %1007 = vadd.xlane.f32.xlu0 %v1006_v45  ;;  %v1264_v0 = vpop.permute.xlu1 %1263 }
 0x6b9   :  { %v2199_v46 = vpop.eup %2198 }
 0x6ba   :  { %v1009_v47 = vsel %vm157_vm2, %v2199_v46, 0.0 }
 0x6bb   :  { %1010 = vadd.xlane.f32.xlu0 %v1009_v47 }
 0x6d1   :  { %1098 = vrot.lane.b32.xlu0 %v2391_v11, %s2276_s14 }
 0x6d5   :  { %1185 = vrot.lane.b32.xlu0 %v2388_v10, %s2278_s16 }
 0x740   :  { %v1008_v48 = vpop.xlane.xlu0 %1007 }
 0x741   :  { %2200 = vrcp.f32 %v1008_v48 }
 0x744   :  { %v1011_v49 = vpop.xlane.xlu0 %1010 }
 0x745   :  { %2202 = vrcp.f32 %v1011_v49 }
 0x748   :  { %v1099_v50 = vpop.permute.xlu0 %1098 }
 0x749   :  { %2096 = vmatpush3.msra.mxu1 %v1099_v50 }
 0x74a   :  { %2105 = vmatprep.subr.mxu1 %v2267_v6 }
 0x74c   :  { %v1186_v63 = vpop.permute.xlu0 %1185 }
 0x74e   :  { %v2201_v51 = vpop.eup %2200 }
 0x74f   :  { %v1014_v52 = vmul.f32 %v2201_v51, %v1008_v48 }
 0x751   :  { %v1016_v53 = vsub.f32 2.0, %v1014_v52 }
 0x752   :  { %v2203_v54 = vpop.eup %2202 }
 0x753   :  { %v1018_v56 = vmul.f32 %v2201_v51, %v1016_v53  ;;  %v1015_v57 = vmul.f32 %v2203_v54, %v1011_v49  ;;  %v1956_v53 = vld [vmem:[%s2605_s4] ss:$0 sm:$0xff] }
 0x755   :  { %v1020_v58 = vmul.f32 %v2197_v44, %v1018_v56  ;;  %v1017_v59 = vsub.f32 2.0, %v1015_v57  ;;  %v1534_v44 = vld [vmem:[%s2604_s3] sm:$0xff] }
 0x757   :  { %v1019_v60 = vmul.f32 %v2203_v54, %v1017_v59  ;;  %2093 = vmatmul.mubr.msk.f32.vlgmr.msra.gmra.mxu0 %vm157_vm2, %v1020_v58 }
 0x758   :  { %2101 = vmatpush3.xpose.msk.msra.mxu0 %vm157_vm2, %v1188_v55  ;;  %2102 = vmatprep.mubr.msk.f32.mxu0 %vm2268_vm1, %v2267_v6 }
 0x759   :  { %v1021_v62 = vmul.f32 %v2199_v46, %v1019_v60  ;;  %2110 = vmatprep.subr.mxu0 %v2267_v6 }
 0x75b   :  { %2098 = vmatmul.mubr.msk.f32.vlgmr.msra.gmra.mxu1 %vm157_vm2, %v1021_v62  ;;  %2103 = vmatmul.mubr.msk.f32.vlgmr.msra.gmra.mxu0 %vm157_vm2, %v1186_v63 }
 0x75c   :  { %2106 = vmatpush3.xpose.msk.msra.mxu1 %vm157_vm2, %v1266_v61  ;;  %2107 = vmatprep.mubr.msk.f32.mxu1 %vm2268_vm1, %v2267_v6 }
 0x75d   :  { %2115 = vmatprep.subr.mxu1 %v2267_v6  ;;  %2112 = vmatprep.mubr.msk.f32.mxu0 %vm2268_vm1, %v2267_v6 }
 0x75f   :  { %2108 = vmatmul.mubr.msk.f32.vlgmr.msra.gmra.mxu1 %vm157_vm2, %v1264_v0 }
 0x760   :  { %2117 = vmatprep.mubr.msk.f32.mxu1 %vm2268_vm1, %v2267_v6 }
 0x817   :  { %v1094_v1 = vpop.f32.mrf.mxu0 }
 0x819   :  { %v2094_v3 = vpop.f32.mrf.mxu0 }
 0x81b   :  { %v1170_v4 = vpop.f32.mrf.mxu1  ;;  %v1259_v7 = vpop.f32.mrf.mxu0 }
 0x81c   :  { %v1341_v8 = vsel %vm157_vm2, %v1259_v7, -inf }
 0x81d   :  { %v2099_v9 = vpop.f32.mrf.mxu1  ;;  %1342 = vmax.xlane.f32.xlu0 %v1341_v8  ;;  %v2104_v12 = vpop.f32.mrf.mxu0 }
 0x81e   :  { %v1675_v12 = vld [vmem:[%s2608_s7 + $0x10] sm:$0xff] }
 0x81f   :  { %v1337_v13 = vpop.f32.mrf.mxu1 }
 0x820   :  { %v1344_v14 = vsel %vm157_vm2, %v1337_v13, -inf }
 0x821   :  { %1345 = vmax.xlane.f32.xlu1 %v1344_v14  ;;  %v2109_v15 = vpop.f32.mrf.mxu1  ;;  %v1673_v14 = vld [vmem:[%s2608_s7] sm:$0xff] }
 0x822   :  { %v1774_v15 = vld [vmem:[%s2610_s9 + $0x38] sm:$0xff] }
 0x832   :  { %1369 = vrot.lane.b32.xlu1 %v2388_v10, %s2279_s17 }
 0x836   :  { %829 = vrot.lane.b32.xlu1 %v2464_v27, %s2266_s29 }
 0x83a   :  { %831 = vrot.lane.b32.xlu1 %v2466_v29, %s2266_s29 }
 0x83e   :  { %1178 = vrot.lane.b32.xlu1 %v1170_v4, %s2280_s18 }
 0x8a6   :  { %v1343_v6 = vpop.xlane.xlu0 %1342 }
 0x8a7   :  { %v1347_v16 = vsub.f32 %v1259_v7, %v1343_v6  ;;  %v1773_v6 = vld [vmem:[%s2610_s9 + $0x30] sm:$0xff] }
 0x8a9   :  { %v1349_v17 = vmul.f32 1.442695, %v1347_v16  ;;  %v1772_v16 = vld [vmem:[%s2610_s9 + $0x28] sm:$0xff] }
 0x8aa   :  { %v1346_v18 = vpop.xlane.xlu1 %1345 }
 0x8ab   :  { %2204 = vpow2.f32 %v1349_v17  ;;  %v1348_v19 = vsub.f32 %v1337_v13, %v1346_v18  ;;  %v1674_v13 = vld [vmem:[%s2608_s7 + $0x8] sm:$0xff]  ;;  %v1771_v17 = vld [vmem:[%s2610_s9 + $0x20] sm:$0xff] }
 0x8ad   :  { %v1351_v20 = vmul.f32 1.442695, %v1348_v19 }
 0x8ae   :  { %v1370_v21 = vpop.permute.xlu1 %1369 }
 0x8af   :  { %2206 = vpow2.f32 %v1351_v20  ;;  %2111 = vmatpush3.msra.mxu0 %v1370_v21 }
 0x8b0   :  { %2120 = vmatprep.subr.mxu0 %v1537_v41 }
 0x8b2   :  { %v830_v10 = vpop.permute.xlu1 %829 }
 0x8b3   :  { %836 = vst.msk [vmem:[#allocation2] sm:$0xff] %vm835_vm3, %v830_v10 }
 0x8b6   :  { %v832_v22 = vpop.permute.xlu1 %831 }
 0x8b7   :  { %837 = vst.msk [vmem:[#allocation2 + $0x8] sm:$0xff] %vm835_vm3, %v832_v22 }
 0x8b8   :  { %v2205_v23 = vpop.eup %2204 }
 0x8b9   :  { %v1353_v24 = vsel %vm157_vm2, %v2205_v23, 0.0 }
 0x8ba   :  { %v1179_v25 = vpop.permute.xlu1 %1178  ;;  %1354 = vadd.xlane.f32.xlu0 %v1353_v24  ;;  %v1959_v24 = vld [vmem:[%s2606_s5] ss:$0 sm:$0xff] }
 0x8bb   :  { %1184 = vst.msk [vmem:[#allocation2 + $0x8] sm:$0xff] %vm1182_vm4, %v1179_v25 }
 0x8bc   :  { %v2207_v26 = vpop.eup %2206 }
 0x8bd   :  { %v1356_v27 = vsel %vm157_vm2, %v2207_v26, 0.0 }
 0x8be   :  { %1357 = vadd.xlane.f32.xlu0 %v1356_v27 }
 0x8d4   :  { %1445 = vrot.lane.b32.xlu0 %v2391_v11, %s2279_s17 }
 0x8d8   :  { %1176 = vrot.lane.b32.xlu0 %v1094_v1, %s2280_s18 }
 0x943   :  { %v1355_v28 = vpop.xlane.xlu0 %1354 }
 0x944   :  { %2208 = vrcp.f32 %v1355_v28 }
 0x947   :  { %v1358_v29 = vpop.xlane.xlu0 %1357 }
 0x948   :  { %2210 = vrcp.f32 %v1358_v29 }
 0x94b   :  { %v1446_v30 = vpop.permute.xlu0 %1445 }
 0x94c   :  { %2116 = vmatpush3.msra.mxu1 %v1446_v30 }
 0x94f   :  { %v1177_v31 = vpop.permute.xlu0 %1176 }
 0x950   :  { %1183 = vst.msk [vmem:[#allocation2] sm:$0xff] %vm1182_vm4, %v1177_v31 }
 0x951   :  { %v2209_v32 = vpop.eup %2208 }
 0x952   :  { %v1361_v33 = vmul.f32 %v2209_v32, %v1355_v28 }
 0x954   :  { %v1363_v34 = vsub.f32 2.0, %v1361_v33  ;;  %v1770_v33 = vld [vmem:[%s2610_s9 + $0x18] sm:$0xff] }
 0x955   :  { %v2211_v35 = vpop.eup %2210 }
 0x956   :  { %v1365_v36 = vmul.f32 %v2209_v32, %v1363_v34  ;;  %v1362_v37 = vmul.f32 %v2211_v35, %v1358_v29  ;;  %v1769_v34 = vld [vmem:[%s2610_s9 + $0x10] sm:$0xff] }
 0x958   :  { %v1367_v38 = vmul.f32 %v2205_v23, %v1365_v36  ;;  %v1364_v39 = vsub.f32 2.0, %v1362_v37  ;;  %v1767_v36 = vld [vmem:[%s2610_s9] sm:$0xff] }
 0x959   :  { %v1961_v37 = vld [vmem:[%s2609_s8] ss:$0 sm:$0xff] }
 0x95a   :  { %v1366_v40 = vmul.f32 %v2211_v35, %v1364_v39  ;;  %2113 = vmatmul.mubr.msk.f32.vlgmr.msra.gmra.mxu0 %vm157_vm2, %v1367_v38  ;;  %v1768_v35 = vld [vmem:[%s2610_s9 + $0x8] sm:$0xff] }
 0x95b   :  { %2121 = vmatpush3.msra.mxu0 %v1537_v41 }
 0x95c   :  { %v1368_v11 = vmul.f32 %v2207_v26, %v1366_v40  ;;  %2122 = vmatprep.subr.mxu0 %v1536_v42  ;;  %v1960_v26 = vld [vmem:[%s2607_s6] ss:$0 sm:$0xff] }
 0x95d   :  { %2123 = vmatpush3.msra.mxu0 %v1536_v42 }
 0x95e   :  { %2118 = vmatmul.mubr.msk.f32.vlgmr.msra.gmra.mxu1 %vm157_vm2, %v1368_v11  ;;  %2124 = vmatprep.subr.mxu0 %v1535_v43 }
 0x95f   :  { %2125 = vmatpush3.msra.mxu0 %v1535_v43  ;;  %v1964_v43 = vld [vmem:[%s2611_s10] ss:$0 sm:$0xff] }
 0x960   :  { %2126 = vmatprep.subr.mxu0 %v1534_v44 }
 0x961   :  { %2127 = vmatpush3.msra.mxu0 %v1534_v44 }
 0x962   :  { %2142 = vmatprep.subr.mxu0 %v1774_v15 }
 0xa1a   :  { %v1441_v45 = vpop.f32.mrf.mxu0 }
 0xa1b   :  { %1523 = vrot.lane.b32.xlu0 %v1441_v45, %s2281_s24 }
 0xa1c   :  { %v2114_v46 = vpop.f32.mrf.mxu0 }
 0xa1e   :  { %v1517_v47 = vpop.f32.mrf.mxu1 }
 0xa1f   :  { %1525 = vrot.lane.b32.xlu1 %v1517_v47, %s2281_s24 }
 0xa20   :  { %v2119_v48 = vpop.f32.mrf.mxu1 }
 0xa8d   :  { %v1524_v49 = vpop.permute.xlu0 %1523 }
 0xa8e   :  { %1530 = vst.msk [vmem:[#allocation2] sm:$0xff] %vm1529_vm5, %v1524_v49 }
 0xa91   :  { %v1526_v50 = vpop.permute.xlu1 %1525 }
 0xa92   :  { %1531 = vst.msk [vmem:[#allocation2 + $0x8] sm:$0xff] %vm1529_vm5, %v1526_v50 }
 0xa95   :  { %v1532_v51 = vld [vmem:[#allocation2] sm:$0xff] }
 0xa96   :  { %2128 = vmatprep.mubr.msk.f32.mxu0 %vm72_vm0, %v1532_v51 }
 0xa99   :  { %v1533_v52 = vld [vmem:[#allocation2 + $0x8] sm:$0xff] }
 0xa9a   :  { %2129 = vmatmul.mubr.msk.f32.vlgmr.msra.gmra.mxu0 %vm72_vm0, %v1533_v52 }
 0xa9b   :  { %2143 = vmatpush3.msra.mxu0 %v1774_v15 }
 0xa9c   :  { %2144 = vmatprep.subr.mxu0 %v1773_v6 }
 0xa9d   :  { %2145 = vmatpush3.msra.mxu0 %v1773_v6 }
 0xa9e   :  { %2146 = vmatprep.subr.mxu0 %v1772_v16 }
 0xa9f   :  { %2147 = vmatpush3.msra.mxu0 %v1772_v16 }
 0xaa0   :  { %2148 = vmatprep.subr.mxu0 %v1771_v17 }
 0xaa1   :  { %2149 = vmatpush3.msra.mxu0 %v1771_v17 }
 0xaa2   :  { %2150 = vmatprep.subr.mxu0 %v1770_v33 }
 0xaa3   :  { %2151 = vmatpush3.msra.mxu0 %v1770_v33 }
 0xaa4   :  { %2152 = vmatprep.subr.mxu0 %v1769_v34 }
 0xaa5   :  { %2153 = vmatpush3.msra.mxu0 %v1769_v34 }
 0xaa6   :  { %2154 = vmatprep.subr.mxu0 %v1768_v35 }
 0xaa7   :  { %2155 = vmatpush3.msra.mxu0 %v1768_v35 }
 0xaa8   :  { %2156 = vmatprep.subr.mxu0 %v1767_v36 }
 0xaa9   :  { %2157 = vmatpush3.msra.mxu0 %v1767_v36 }
 0xb5a   :  { %v2130_v54 = vpop.f32.mrf.mxu0 }
 0xb5b   :  { %v1623_v55 = vadd.f32 %v2130_v54, %v1956_v53 }
 0xb5c   :  { %v1617_v56 = vpop.f32.mrf.mxu0 }
 0xb5d   :  { %v1618_v57 = vadd.f32 %v1956_v53, %v1617_v56  ;;  %v1627_v58 = vadd.f32 %v1623_v55, %v2375_v5 }
 0xb5f   :  { %v1633_v59 = vsel %vm72_vm0, %v1627_v58, 0.0  ;;  %v1626_v60 = vadd.f32 %v1618_v57, %v2365_v2  ;;  %v1676_v2 = vld [vmem:[%s2608_s7 + $0x18] sm:$0xff] }
 0xb60   :  { %1634 = vadd.xlane.f32.xlu1 %v1633_v59  ;;  %2131 = vmatprep.subr.mxu1 %v1676_v2 }
 0xb61   :  { %v1630_v61 = vsel %vm72_vm0, %v1626_v60, 0.0  ;;  %2132 = vmatpush3.msra.mxu1 %v1676_v2  ;;  %v1968_v2 = vld [vmem:[%s2613_s12] ss:$0 sm:$0xff] }
 0xb62   :  { %1631 = vadd.xlane.f32.xlu0 %v1630_v61  ;;  %2133 = vmatprep.subr.mxu1 %v1675_v12 }
 0xb63   :  { %2134 = vmatpush3.msra.mxu1 %v1675_v12 }
 0xb64   :  { %2135 = vmatprep.subr.mxu1 %v1674_v13 }
 0xb65   :  { %2136 = vmatpush3.msra.mxu1 %v1674_v13 }
 0xb66   :  { %2137 = vmatprep.subr.mxu1 %v1673_v14 }
 0xb67   :  { %2138 = vmatpush3.msra.mxu1 %v1673_v14 }
 0xbe9   :  { %v1635_v62 = vpop.xlane.xlu1 %1634 }
 0xbea   :  { %v1638_v63 = vmul.f32 0.03125, %v1635_v62 }
 0xbeb   :  { %v1632_v0 = vpop.xlane.xlu0 %1631 }
 0xbec   :  { %v1637_v1 = vmul.f32 0.03125, %v1632_v0  ;;  %v1640_v3 = vsub.f32 %v1627_v58, %v1638_v63 }
 0xbee   :  { %v1639_v4 = vsub.f32 %v1626_v60, %v1637_v1  ;;  %v1642_v9 = vmul.f32 %v1640_v3, %v1640_v3 }
 0xbf0   :  { %v1641_v7 = vmul.f32 %v1639_v4, %v1639_v4  ;;  %v1646_v5 = vsel %vm72_vm0, %v1642_v9, 0.0 }
 0xbf2   :  { %v1643_v8 = vsel %vm72_vm0, %v1641_v7, 0.0 }
 0xbf3   :  { %1644 = vadd.xlane.f32.xlu0 %v1643_v8  ;;  %v1967_v8 = vld [vmem:[%s2612_s11] ss:$0 sm:$0xff] }
 0xbf7   :  { %1647 = vadd.xlane.f32.xlu0 %v1646_v5 }
 0xc7c   :  { %v1645_v18 = vpop.xlane.xlu0 %1644 }
 0xc7d   :  { %v1649_v19 = vmul.f32 0.03125, %v1645_v18 }
 0xc7f   :  { %v1651_v20 = vadd.f32 1e-10, %v1649_v19 }
 0xc80   :  { %v1648_v21 = vpop.xlane.xlu0 %1647 }
 0xc81   :  { %2212 = vrsqrt.f32 %v1651_v20  ;;  %v1650_v10 = vmul.f32 0.03125, %v1648_v21 }
 0xc83   :  { %v1652_v22 = vadd.f32 1e-10, %v1650_v10 }
 0xc85   :  { %2214 = vrsqrt.f32 %v1652_v22 }
 0xc8e   :  { %v2213_v23 = vpop.eup %2212 }
 0xc8f   :  { %v1655_v25 = vmul.f32 %v2213_v23, %v1639_v4 }
 0xc91   :  { %v1663_v27 = vmul.f32 %v1959_v24, %v1655_v25 }
 0xc92   :  { %v2215_v28 = vpop.eup %2214 }
 0xc93   :  { %v1656_v29 = vmul.f32 %v2215_v28, %v1640_v3  ;;  %v1671_v30 = vadd.f32 %v1960_v26, %v1663_v27 }
 0xc95   :  { %v1664_v31 = vmul.f32 %v1959_v24, %v1656_v29  ;;  %2139 = vmatprep.mubr.msk.f32.mxu1 %vm72_vm0, %v1671_v30 }
 0xc97   :  { %v1672_v32 = vadd.f32 %v1960_v26, %v1664_v31 }
 0xc99   :  { %2140 = vmatmul.mubr.msk.f32.vlgmr.msra.gmra.mxu1 %vm72_vm0, %v1672_v32 }
 0xd59   :  { %v2141_v38 = vpop.f32.mrf.mxu1 }
 0xd5a   :  { %v1762_v39 = vadd.f32 %v2141_v38, %v1961_v37 }
 0xd5b   :  { %v1756_v40 = vpop.f32.mrf.mxu1 }
 0xd5c   :  { %v1757_v11 = vadd.f32 %v1961_v37, %v1756_v40  ;;  %v1766_v42 = vmax.f32 %v1762_v39, 0.0 }
 0xd5e   :  { %v1765_v41 = vmax.f32 %v1757_v11, 0.0 }
 0xd60   :  { %2158 = vmatprep.mubr.msk.f32.mxu0 %vm1782_vm6, %v1765_v41 }
 0xd61   :  { %2159 = vmatmul.mubr.msk.f32.vlgmr.msra.gmra.mxu0 %vm1782_vm6, %v1766_v42 }
 0xe21   :  { %v2160_v44 = vpop.f32.mrf.mxu0 }
 0xe22   :  { %v1861_v45 = vadd.f32 %v2160_v44, %v1964_v43 }
 0xe23   :  { %v1855_v46 = vpop.f32.mrf.mxu0 }
 0xe24   :  { %v1856_v47 = vadd.f32 %v1964_v43, %v1855_v46  ;;  %v1865_v48 = vadd.f32 %v1861_v45, %v1672_v32 }
 0xe26   :  { %v1871_v49 = vsel %vm72_vm0, %v1865_v48, 0.0  ;;  %v1864_v50 = vadd.f32 %v1856_v47, %v1671_v30 }
 0xe27   :  { %1872 = vadd.xlane.f32.xlu0 %v1871_v49 }
 0xe28   :  { %v1868_v51 = vsel %vm72_vm0, %v1864_v50, 0.0 }
 0xe29   :  { %1869 = vadd.xlane.f32.xlu1 %v1868_v51 }
 0xeb0   :  { %v1873_v52 = vpop.xlane.xlu0 %1872 }
 0xeb1   :  { %v1875_v53 = vmul.f32 0.03125, %v1873_v52 }
 0xeb2   :  { %v1870_v54 = vpop.xlane.xlu1 %1869 }
 0xeb3   :  { %v1877_v55 = vsub.f32 %v1865_v48, %v1875_v53  ;;  %v1874_v56 = vmul.f32 0.03125, %v1870_v54 }
 0xeb5   :  { %v1876_v57 = vsub.f32 %v1864_v50, %v1874_v56  ;;  %v1879_v58 = vmul.f32 %v1877_v55, %v1877_v55 }
 0xeb7   :  { %v1883_v59 = vsel %vm72_vm0, %v1879_v58, 0.0  ;;  %v1878_v60 = vmul.f32 %v1876_v57, %v1876_v57 }
 0xeb8   :  { %1884 = vadd.xlane.f32.xlu0 %v1883_v59 }
 0xeb9   :  { %v1880_v61 = vsel %vm72_vm0, %v1878_v60, 0.0 }
 0xeba   :  { %1881 = vadd.xlane.f32.xlu1 %v1880_v61 }
 0xf41   :  { %v1885_v62 = vpop.xlane.xlu0 %1884 }
 0xf42   :  { %v1887_v63 = vmul.f32 0.03125, %v1885_v62 }
 0xf43   :  { %v1882_v0 = vpop.xlane.xlu1 %1881 }
 0xf44   :  { %v1889_v1 = vadd.f32 1e-10, %v1887_v63  ;;  %v1886_v3 = vmul.f32 0.03125, %v1882_v0 }
 0xf46   :  { %2216 = vrsqrt.f32 %v1889_v1  ;;  %v1888_v4 = vadd.f32 1e-10, %v1886_v3 }
 0xf48   :  { %2218 = vrsqrt.f32 %v1888_v4 }
 0xf53   :  { %v2217_v7 = vpop.eup %2216 }
 0xf54   :  { %v1893_v9 = vmul.f32 %v2217_v7, %v1877_v55 }
 0xf55   :  { %v2219_v5 = vpop.eup %2218 }
 0xf56   :  { %v1892_v12 = vmul.f32 %v2219_v5, %v1876_v57  ;;  %v1901_v13 = vmul.f32 %v1967_v8, %v1893_v9 }
 0xf58   :  { %v1900_v14 = vmul.f32 %v1967_v8, %v1892_v12  ;;  %v1909_v15 = vadd.f32 %v1968_v2, %v1901_v13 }
 0xf5a   :  { %v1908_v6 = vadd.f32 %v1968_v2, %v1900_v14  ;;  %1911 = vst.msk [vmem:[#allocation6 + $0x8] sm:$0xff] %vm72_vm0, %v1909_v15 }
 0xf5c   :  { %1910 = vst.msk [vmem:[#allocation6] sm:$0xff] %vm72_vm0, %v1908_v6 }
 0xf5d   :  { %2251 = shalt.err (!%p2248_p9)
}
 0xf5e   :  { %1923 = dma.vmem_to_hbm [thread:$0]  %s1918_s0, 256, %s2614_s13, [#allocation5], %s2265_s28, %s2265_s28, %s2266_s29  }
 0xf5f   :  { %2262 = dma.done.wait [#allocation5], 256  }
 0xf60   :  { %2263 = vsyncadd [#allocation5], 4294967040 }
 0xf61   :  { %1927 = vsyncpa [#allocation4], 1 }
 0xf62   :  { %1928 = vsyncpa [#allocation5], 1 }

</bundles_post_ra>
